<compile_context>
chip_gen: v6e
topology: v6e:2x2x1
jax: 0.10.0
libtpu: 0.0.40
codegen_flags: <defaults>
</compile_context>

<pallas_src>
import functools

import jax
import jax.numpy as jnp
from jax import lax
from jax.experimental import pallas as pl
from jax.experimental.pallas import tpu as pltpu


KW = 5
PADW = 2          # ceil((5 - 1) / 2)
NEG_SLOPE = 0.2
BN_EPS = 1e-5


def _leaky(x):
    return jnp.where(x >= 0, x, NEG_SLOPE * x)


# ------------------------------ Pallas kernel ------------------------------

def _conv_kernel(*refs, kh, kw, ow, has_prologue, has_bias, apply_act, has_bn,
                 rpad, out_dtype):
    """Fused (prev-BN+LeakyReLU) -> KhxKw stride-1 conv -> (bias/act | stats).

    Grid = (batch, output_row).  Refs (in order):
      x (hp, wp, cin) bf16   whole padded image, VMEM resident per batch step
      w (kh*kw, cin, cout) bf16
      [scale, shift] (1, cin) f32      -- previous layer's BN, fused prologue
      [bias] (1, cout) f32
      o (ow, cout)                     -- one output row per grid step
      [sum, ssq] (1, cout) f32         -- per-image channel stats (accumulated)
    """
    it = iter(refs)
    x_ref = next(it)
    w_ref = next(it)
    if has_prologue:
        scale_ref = next(it)
        shift_ref = next(it)
    if has_bias:
        bias_ref = next(it)
    o_ref = next(it)
    if has_bn:
        sum_ref = next(it)
        ssq_ref = next(it)

    oh = pl.program_id(1)
    hp, wp, _ = x_ref.shape
    cout = o_ref.shape[-1]

    if has_prologue:
        scale = scale_ref[...]
        shift = shift_ref[...]
        col = lax.broadcasted_iota(jnp.int32, (wp, 1), 0)
        col_ok = jnp.logical_and(col >= rpad, col < wp - rpad)

    acc = jnp.zeros((ow, cout), jnp.float32)
    for i in range(kh):
        r = oh + i
        row = x_ref[r]                                   # (wp, cin)
        if has_prologue:
            # Previous layer's BatchNorm affine + LeakyReLU, fused here.
            rowf = row.astype(jnp.float32) * scale + shift
            rowf = _leaky(rowf)
            # Spatial zero-padding must be zero *after* the activation.
            row_ok = jnp.logical_and(r >= rpad, r < hp - rpad)
            rowf = jnp.where(jnp.logical_and(row_ok, col_ok), rowf, 0.0)
            row = rowf.astype(jnp.bfloat16)
        for j in range(kw):
            lhs = row[j:j + ow, :]                       # (ow, cin) bf16
            acc = acc + jnp.dot(lhs, w_ref[i * kw + j],
                                preferred_element_type=jnp.float32)

    if has_bias:
        acc = acc + bias_ref[...]
    if apply_act:
        acc = _leaky(acc)
    y = acc.astype(out_dtype)
    o_ref[...] = y

    if has_bn:
        # Channel sum / sum-of-squares via a ones-row matmul (MXU, keeps the
        # VPU/XLU slots free); accumulated directly in the resident out buffer.
        yf = y.astype(jnp.float32)
        ones = jnp.ones((1, ow), jnp.float32)
        rs = jnp.dot(ones, yf, preferred_element_type=jnp.float32)
        rq = jnp.dot(ones, yf * yf, preferred_element_type=jnp.float32)

        @pl.when(oh == 0)
        def _():
            sum_ref[...] = jnp.zeros_like(sum_ref)
            ssq_ref[...] = jnp.zeros_like(ssq_ref)

        sum_ref[...] += rs
        ssq_ref[...] += rq


# --------------------------- pallas_call wrapper ----------------------------

def conv_layer(x, w, bias, scale_in, shift_in, *, stride, has_bn, apply_act,
               out_dtype):
    """x: (N, H, W, C) bf16 (raw pre-BN output of previous layer if fused)."""
    N, H, W, C = x.shape
    has_prologue = scale_in is not None
    has_bias = bias is not None

    if stride == 2:
        # Stride-2 5x5 conv == stride-1 3x3 conv on a space-to-depth input.
        if has_prologue:
            assert H % 2 == 0 and W % 2 == 0, (
                "fused-prologue stride-2 path assumes even spatial dims")
        oh = (H - 1) // 2 + 1
        ow = (W - 1) // 2 + 1
        xp = jnp.pad(x, ((0, 0),
                         (PADW, 2 * oh + 2 - H),
                         (PADW, 2 * ow + 2 - W),
                         (0, 0)))
        hp, wp = oh + 2, ow + 2
        xk = (xp.reshape(N, hp, 2, wp, 2, C)
                .transpose(0, 1, 3, 2, 4, 5)
                .reshape(N, hp, wp, 4 * C))
        kh = kw = 3
        cin = 4 * C
        rpad = 1
        if has_prologue:
            scale_in = jnp.tile(scale_in, (1, 4))
            shift_in = jnp.tile(shift_in, (1, 4))
    else:
        oh, ow = H, W
        xk = jnp.pad(x, ((0, 0), (PADW, PADW), (PADW, PADW), (0, 0)))
        hp, wp = H + 2 * PADW, W + 2 * PADW
        kh = kw = KW
        cin = C
        rpad = PADW

    cout = w.shape[-1]

    in_specs = [
        pl.BlockSpec((None, hp, wp, cin), lambda n, r: (n, 0, 0, 0)),
        pl.BlockSpec((kh * kw, cin, cout), lambda n, r: (0, 0, 0)),
    ]
    args = [xk.astype(jnp.bfloat16), w]
    if has_prologue:
        in_specs += [pl.BlockSpec((1, cin), lambda n, r: (0, 0)),
                     pl.BlockSpec((1, cin), lambda n, r: (0, 0))]
        args += [scale_in.astype(jnp.float32), shift_in.astype(jnp.float32)]
    if has_bias:
        in_specs.append(pl.BlockSpec((1, cout), lambda n, r: (0, 0)))
        args.append(bias)

    y_shape = jax.ShapeDtypeStruct((N, oh, ow, cout), out_dtype)
    y_spec = pl.BlockSpec((None, None, ow, cout), lambda n, r: (n, r, 0, 0))
    if has_bn:
        out_shape = (y_shape,
                     jax.ShapeDtypeStruct((N, 1, cout), jnp.float32),
                     jax.ShapeDtypeStruct((N, 1, cout), jnp.float32))
        out_specs = (y_spec,
                     pl.BlockSpec((None, 1, cout), lambda n, r: (n, 0, 0)),
                     pl.BlockSpec((None, 1, cout), lambda n, r: (n, 0, 0)))
        dims = ("parallel", "arbitrary")   # stats accumulate over output rows
    else:
        out_shape = y_shape
        out_specs = y_spec
        dims = ("parallel", "parallel")

    kernel = functools.partial(
        _conv_kernel, kh=kh, kw=kw, ow=ow, has_prologue=has_prologue,
        has_bias=has_bias, apply_act=apply_act, has_bn=has_bn, rpad=rpad,
        out_dtype=out_dtype)

    out_bytes = 2 if out_dtype == jnp.bfloat16 else 4
    flops = 2 * N * oh * ow * kh * kw * cin * cout
    bytes_acc = xk.size * 2 + w.size * 2 + N * oh * ow * cout * out_bytes

    return pl.pallas_call(
        kernel,
        out_shape=out_shape,
        grid_spec=pltpu.PrefetchScalarGridSpec(
            num_scalar_prefetch=0,
            grid=(N, oh),
            in_specs=in_specs,
            out_specs=out_specs,
        ),
        compiler_params=pltpu.CompilerParams(
            dimension_semantics=dims,
            vmem_limit_bytes=48 * 1024 * 1024),   # > v5e 16MiB default, < v7x 64MiB
        cost_estimate=pl.CostEstimate(flops=flops, transcendentals=0,
                                      bytes_accessed=int(bytes_acc)),
    )(*args)


# ------------------------------- JAX glue ----------------------------------

def _bn_scale_shift(sum_n, ssq_n, gamma, beta, count):
    """Training-mode BatchNorm2d (biased variance, eps=1e-5) -> scale/shift."""
    s = jnp.sum(sum_n, axis=(0, 1))
    q = jnp.sum(ssq_n, axis=(0, 1))
    mean = s / count
    var = jnp.maximum(q / count - mean * mean, 0.0)
    inv = lax.rsqrt(var + BN_EPS)
    scale = gamma * inv
    shift = beta - mean * scale
    return scale.reshape(1, -1), shift.reshape(1, -1)


def build_layer_cfgs(input_nc, ndf, n_layers):
    """Mirrors NLayerDiscriminator.__init__ sequence construction."""
    cfgs = [dict(cin=input_nc, cout=ndf, stride=2, bn=False, act=True)]
    nf_mult = 1
    for n in range(1, n_layers):
        nf_mult_prev = nf_mult
        nf_mult = min(2 ** n, 8)
        cfgs.append(dict(cin=ndf * nf_mult_prev, cout=ndf * nf_mult,
                         stride=2, bn=True, act=True))
    nf_mult_prev = nf_mult
    nf_mult = min(2 ** n_layers, 8)
    cfgs.append(dict(cin=ndf * nf_mult_prev, cout=ndf * nf_mult,
                     stride=1, bn=True, act=True))
    cfgs.append(dict(cin=ndf * nf_mult, cout=1, stride=1, bn=False, act=False))
    return cfgs


def init_params(key, cfgs):
    params = []
    for li, cfg in enumerate(cfgs):
        key, kw_, kb_, kg_, kbt_ = jax.random.split(key, 5)
        cin, cout = cfg["cin"], cfg["cout"]
        last = li == len(cfgs) - 1
        cout_pad = 128 if last else cout   # lane-dense final store; sliced off later
        # PyTorch conv weight [Cout, Cin, KH, KW] -> tap-major (T, Cin_eff, Cout).
        w_torch = 0.05 * jax.random.normal(kw_, (cout, cin, KW, KW), jnp.float32)
        w_hwio = jnp.transpose(w_torch, (2, 3, 1, 0))             # (5,5,cin,cout)
        w_hwio = jnp.pad(w_hwio, ((0, 0), (0, 0), (0, 0), (0, cout_pad - cout)))
        if cfg["stride"] == 2:
            # 5x5/s2 == 3x3/s1 over space-to-depth(2) input: pad to 6x6, regroup.
            w6 = jnp.pad(w_hwio, ((0, 1), (0, 1), (0, 0), (0, 0)))
            wk = (w6.reshape(3, 2, 3, 2, cin, cout_pad)
                    .transpose(0, 2, 1, 3, 4, 5)
                    .reshape(9, 4 * cin, cout_pad))
        else:
            wk = w_hwio.reshape(KW * KW, cin, cout_pad)
        p = dict(w=wk.astype(jnp.bfloat16))
        if cfg["bn"]:
            # Conv bias preceding training-mode BatchNorm is exactly cancelled
            # by the mean subtraction -> omitted (numerically identical).
            p["gamma"] = 1.0 + 0.1 * jax.random.normal(kg_, (cout,), jnp.float32)
            p["beta"] = 0.1 * jax.random.normal(kbt_, (cout,), jnp.float32)
        else:
            b = 0.05 * jax.random.normal(kb_, (cout,), jnp.float32)
            p["b"] = jnp.pad(b, (0, cout_pad - cout)).reshape(1, cout_pad)
        params.append(p)
    return params


def nlayer_discriminator_forward(x_nchw, params, cfgs):
    x = jnp.transpose(x_nchw, (0, 2, 3, 1)).astype(jnp.bfloat16)  # NCHW -> NHWC
    scale_in = shift_in = None
    for li, (cfg, p) in enumerate(zip(cfgs, params)):
        last = li == len(cfgs) - 1
        out_dtype = jnp.float32 if last else jnp.bfloat16
        res = conv_layer(
            x, p["w"], p.get("b"), scale_in, shift_in,
            stride=cfg["stride"], has_bn=cfg["bn"],
            apply_act=cfg["act"] and not cfg["bn"], out_dtype=out_dtype)
        if cfg["bn"]:
            y, s_n, q_n = res
            count = float(y.shape[0] * y.shape[1] * y.shape[2])
            scale_in, shift_in = _bn_scale_shift(
                s_n, q_n, p["gamma"], p["beta"], count)
        else:
            y = res
            scale_in = shift_in = None
        x = y
    y = x[..., :cfgs[-1]["cout"]]          # drop lane padding of final layer
    return jnp.transpose(y, (0, 3, 1, 2))  # NHWC -> NCHW


# --------------------------------- main -------------------------------------

if __name__ == "__main__":
    # Small, module-consistent configuration: input_nc=4, ndf=8, n_layers=3,
    # use_sigmoid=False (default). Input NCHW = [2, 4, 16, 16].
    INPUT_NC, NDF, N_LAYERS = 4, 8, 3
    key = jax.random.PRNGKey(0)
    key, kx = jax.random.split(key)
    x = jax.random.normal(kx, (2, INPUT_NC, 16, 16), jnp.float32)

    cfgs = build_layer_cfgs(INPUT_NC, NDF, N_LAYERS)
    params = init_params(key, cfgs)

    out = nlayer_discriminator_forward(x, params, cfgs)
    out = jax.block_until_ready(out)

    # Expected PyTorch output shape: [N, 1, H/2^n_layers, W/2^n_layers] = [2, 1, 2, 2]
    assert out.shape == (2, 1, 2, 2), out.shape
    assert bool(jnp.all(jnp.isfinite(out)))
    print("KERNEL_OK")
</pallas_src>

<mosaic_0001>
module attributes {stable_mosaic.version = 11 : i64} {
  func.func @_conv_kernel(%arg0: i32, %arg1: i32, %arg2: memref<1x10x10x16xbf16, #tpu.memory_space<vmem>>, %arg3: memref<9x16x8xbf16, #tpu.memory_space<vmem>>, %arg4: memref<1x8xf32, #tpu.memory_space<vmem>>, %arg5: memref<1x1x8x8xbf16, #tpu.memory_space<vmem>>) attributes {dimension_semantics = [#tpu.dimension_semantics<parallel>, #tpu.dimension_semantics<parallel>], iteration_bounds = array<i64: 2, 8>, scalar_prefetch = 0 : i64, scratch_operands = 0 : i64, tpu.core_type = #tpu.core_type<tc>, window_params = [{transform_indices = @transform_0, window_bounds = array<i64: 1, 10, 10, 16>}, {pipeline_mode = #tpu.pipeline_mode<synchronous>, transform_indices = @transform_1, window_bounds = array<i64: 9, 16, 8>}, {pipeline_mode = #tpu.pipeline_mode<synchronous>, transform_indices = @transform_2, window_bounds = array<i64: 1, 8>}, {transform_indices = @transform_3, window_bounds = array<i64: 1, 1, 8, 8>}]} {
    %cst = arith.constant 0.000000e+00 : f32
    %0 = vector.broadcast %cst : f32 to vector<8x8xf32>
    %c0_i32 = arith.constant 0 : i32
    %1 = arith.addi %arg1, %c0_i32 : i32
    %c0 = arith.constant 0 : index
    %2 = arith.index_cast %1 : i32 to index
    %c0_0 = arith.constant 0 : index
    %c0_1 = arith.constant 0 : index
    %3 = vector.load %arg2[%c0, %2, %c0_0, %c0_1] : memref<1x10x10x16xbf16, #tpu.memory_space<vmem>>, vector<1x1x10x16xbf16>
    %4 = vector.shape_cast %3 : vector<1x1x10x16xbf16> to vector<10x16xbf16>
    %5 = vector.extract_strided_slice %4 {offsets = [0, 0], sizes = [8, 16], strides = [1, 1]} : vector<10x16xbf16> to vector<8x16xbf16>
    %c0_2 = arith.constant 0 : index
    %c0_3 = arith.constant 0 : index
    %c0_4 = arith.constant 0 : index
    %6 = vector.load %arg3[%c0_2, %c0_3, %c0_4] : memref<9x16x8xbf16, #tpu.memory_space<vmem>>, vector<1x16x8xbf16>
    %7 = vector.shape_cast %6 : vector<1x16x8xbf16> to vector<16x8xbf16>
    %cst_5 = arith.constant dense<0.000000e+00> : vector<8x8xf32>
    %8 = tpu.matmul %5, %7, %cst_5 {dimension_numbers = #tpu.dot_dimension_numbers<[1], [0], [0], [1], [0, 0, 1, 1], [], []>} : vector<8x16xbf16>, vector<16x8xbf16>, vector<8x8xf32> -> vector<8x8xf32>
    %9 = arith.addf %0, %8 : vector<8x8xf32>
    %10 = vector.extract_strided_slice %4 {offsets = [1, 0], sizes = [8, 16], strides = [1, 1]} : vector<10x16xbf16> to vector<8x16xbf16>
    %c1 = arith.constant 1 : index
    %c0_6 = arith.constant 0 : index
    %c0_7 = arith.constant 0 : index
    %11 = vector.load %arg3[%c1, %c0_6, %c0_7] : memref<9x16x8xbf16, #tpu.memory_space<vmem>>, vector<1x16x8xbf16>
    %12 = vector.shape_cast %11 : vector<1x16x8xbf16> to vector<16x8xbf16>
    %cst_8 = arith.constant dense<0.000000e+00> : vector<8x8xf32>
    %13 = tpu.matmul %10, %12, %cst_8 {dimension_numbers = #tpu.dot_dimension_numbers<[1], [0], [0], [1], [0, 0, 1, 1], [], []>} : vector<8x16xbf16>, vector<16x8xbf16>, vector<8x8xf32> -> vector<8x8xf32>
    %14 = arith.addf %9, %13 : vector<8x8xf32>
    %15 = vector.extract_strided_slice %4 {offsets = [2, 0], sizes = [8, 16], strides = [1, 1]} : vector<10x16xbf16> to vector<8x16xbf16>
    %c2 = arith.constant 2 : index
    %c0_9 = arith.constant 0 : index
    %c0_10 = arith.constant 0 : index
    %16 = vector.load %arg3[%c2, %c0_9, %c0_10] : memref<9x16x8xbf16, #tpu.memory_space<vmem>>, vector<1x16x8xbf16>
    %17 = vector.shape_cast %16 : vector<1x16x8xbf16> to vector<16x8xbf16>
    %cst_11 = arith.constant dense<0.000000e+00> : vector<8x8xf32>
    %18 = tpu.matmul %15, %17, %cst_11 {dimension_numbers = #tpu.dot_dimension_numbers<[1], [0], [0], [1], [0, 0, 1, 1], [], []>} : vector<8x16xbf16>, vector<16x8xbf16>, vector<8x8xf32> -> vector<8x8xf32>
    %19 = arith.addf %14, %18 : vector<8x8xf32>
    %c1_i32 = arith.constant 1 : i32
    %20 = arith.addi %arg1, %c1_i32 : i32
    %c0_12 = arith.constant 0 : index
    %21 = arith.index_cast %20 : i32 to index
    %c0_13 = arith.constant 0 : index
    %c0_14 = arith.constant 0 : index
    %22 = vector.load %arg2[%c0_12, %21, %c0_13, %c0_14] : memref<1x10x10x16xbf16, #tpu.memory_space<vmem>>, vector<1x1x10x16xbf16>
    %23 = vector.shape_cast %22 : vector<1x1x10x16xbf16> to vector<10x16xbf16>
    %24 = vector.extract_strided_slice %23 {offsets = [0, 0], sizes = [8, 16], strides = [1, 1]} : vector<10x16xbf16> to vector<8x16xbf16>
    %c3 = arith.constant 3 : index
    %c0_15 = arith.constant 0 : index
    %c0_16 = arith.constant 0 : index
    %25 = vector.load %arg3[%c3, %c0_15, %c0_16] : memref<9x16x8xbf16, #tpu.memory_space<vmem>>, vector<1x16x8xbf16>
    %26 = vector.shape_cast %25 : vector<1x16x8xbf16> to vector<16x8xbf16>
    %cst_17 = arith.constant dense<0.000000e+00> : vector<8x8xf32>
    %27 = tpu.matmul %24, %26, %cst_17 {dimension_numbers = #tpu.dot_dimension_numbers<[1], [0], [0], [1], [0, 0, 1, 1], [], []>} : vector<8x16xbf16>, vector<16x8xbf16>, vector<8x8xf32> -> vector<8x8xf32>
    %28 = arith.addf %19, %27 : vector<8x8xf32>
    %29 = vector.extract_strided_slice %23 {offsets = [1, 0], sizes = [8, 16], strides = [1, 1]} : vector<10x16xbf16> to vector<8x16xbf16>
    %c4 = arith.constant 4 : index
    %c0_18 = arith.constant 0 : index
    %c0_19 = arith.constant 0 : index
    %30 = vector.load %arg3[%c4, %c0_18, %c0_19] : memref<9x16x8xbf16, #tpu.memory_space<vmem>>, vector<1x16x8xbf16>
    %31 = vector.shape_cast %30 : vector<1x16x8xbf16> to vector<16x8xbf16>
    %cst_20 = arith.constant dense<0.000000e+00> : vector<8x8xf32>
    %32 = tpu.matmul %29, %31, %cst_20 {dimension_numbers = #tpu.dot_dimension_numbers<[1], [0], [0], [1], [0, 0, 1, 1], [], []>} : vector<8x16xbf16>, vector<16x8xbf16>, vector<8x8xf32> -> vector<8x8xf32>
    %33 = arith.addf %28, %32 : vector<8x8xf32>
    %34 = vector.extract_strided_slice %23 {offsets = [2, 0], sizes = [8, 16], strides = [1, 1]} : vector<10x16xbf16> to vector<8x16xbf16>
    %c5 = arith.constant 5 : index
    %c0_21 = arith.constant 0 : index
    %c0_22 = arith.constant 0 : index
    %35 = vector.load %arg3[%c5, %c0_21, %c0_22] : memref<9x16x8xbf16, #tpu.memory_space<vmem>>, vector<1x16x8xbf16>
    %36 = vector.shape_cast %35 : vector<1x16x8xbf16> to vector<16x8xbf16>
    %cst_23 = arith.constant dense<0.000000e+00> : vector<8x8xf32>
    %37 = tpu.matmul %34, %36, %cst_23 {dimension_numbers = #tpu.dot_dimension_numbers<[1], [0], [0], [1], [0, 0, 1, 1], [], []>} : vector<8x16xbf16>, vector<16x8xbf16>, vector<8x8xf32> -> vector<8x8xf32>
    %38 = arith.addf %33, %37 : vector<8x8xf32>
    %c2_i32 = arith.constant 2 : i32
    %39 = arith.addi %arg1, %c2_i32 : i32
    %c0_24 = arith.constant 0 : index
    %40 = arith.index_cast %39 : i32 to index
    %c0_25 = arith.constant 0 : index
    %c0_26 = arith.constant 0 : index
    %41 = vector.load %arg2[%c0_24, %40, %c0_25, %c0_26] : memref<1x10x10x16xbf16, #tpu.memory_space<vmem>>, vector<1x1x10x16xbf16>
    %42 = vector.shape_cast %41 : vector<1x1x10x16xbf16> to vector<10x16xbf16>
    %43 = vector.extract_strided_slice %42 {offsets = [0, 0], sizes = [8, 16], strides = [1, 1]} : vector<10x16xbf16> to vector<8x16xbf16>
    %c6 = arith.constant 6 : index
    %c0_27 = arith.constant 0 : index
    %c0_28 = arith.constant 0 : index
    %44 = vector.load %arg3[%c6, %c0_27, %c0_28] : memref<9x16x8xbf16, #tpu.memory_space<vmem>>, vector<1x16x8xbf16>
    %45 = vector.shape_cast %44 : vector<1x16x8xbf16> to vector<16x8xbf16>
    %cst_29 = arith.constant dense<0.000000e+00> : vector<8x8xf32>
    %46 = tpu.matmul %43, %45, %cst_29 {dimension_numbers = #tpu.dot_dimension_numbers<[1], [0], [0], [1], [0, 0, 1, 1], [], []>} : vector<8x16xbf16>, vector<16x8xbf16>, vector<8x8xf32> -> vector<8x8xf32>
    %47 = arith.addf %38, %46 : vector<8x8xf32>
    %48 = vector.extract_strided_slice %42 {offsets = [1, 0], sizes = [8, 16], strides = [1, 1]} : vector<10x16xbf16> to vector<8x16xbf16>
    %c7 = arith.constant 7 : index
    %c0_30 = arith.constant 0 : index
    %c0_31 = arith.constant 0 : index
    %49 = vector.load %arg3[%c7, %c0_30, %c0_31] : memref<9x16x8xbf16, #tpu.memory_space<vmem>>, vector<1x16x8xbf16>
    %50 = vector.shape_cast %49 : vector<1x16x8xbf16> to vector<16x8xbf16>
    %cst_32 = arith.constant dense<0.000000e+00> : vector<8x8xf32>
    %51 = tpu.matmul %48, %50, %cst_32 {dimension_numbers = #tpu.dot_dimension_numbers<[1], [0], [0], [1], [0, 0, 1, 1], [], []>} : vector<8x16xbf16>, vector<16x8xbf16>, vector<8x8xf32> -> vector<8x8xf32>
    %52 = arith.addf %47, %51 : vector<8x8xf32>
    %53 = vector.extract_strided_slice %42 {offsets = [2, 0], sizes = [8, 16], strides = [1, 1]} : vector<10x16xbf16> to vector<8x16xbf16>
    %c8 = arith.constant 8 : index
    %c0_33 = arith.constant 0 : index
    %c0_34 = arith.constant 0 : index
    %54 = vector.load %arg3[%c8, %c0_33, %c0_34] : memref<9x16x8xbf16, #tpu.memory_space<vmem>>, vector<1x16x8xbf16>
    %55 = vector.shape_cast %54 : vector<1x16x8xbf16> to vector<16x8xbf16>
    %cst_35 = arith.constant dense<0.000000e+00> : vector<8x8xf32>
    %56 = tpu.matmul %53, %55, %cst_35 {dimension_numbers = #tpu.dot_dimension_numbers<[1], [0], [0], [1], [0, 0, 1, 1], [], []>} : vector<8x16xbf16>, vector<16x8xbf16>, vector<8x8xf32> -> vector<8x8xf32>
    %57 = arith.addf %52, %56 : vector<8x8xf32>
    %c0_36 = arith.constant 0 : index
    %c0_37 = arith.constant 0 : index
    %58 = vector.load %arg4[%c0_36, %c0_37] : memref<1x8xf32, #tpu.memory_space<vmem>>, vector<1x8xf32>
    %59 = vector.broadcast %58 : vector<1x8xf32> to vector<8x8xf32>
    %60 = arith.addf %57, %59 : vector<8x8xf32>
    %cst_38 = arith.constant 0.000000e+00 : f32
    %61 = vector.broadcast %cst_38 : f32 to vector<8x8xf32>
    %62 = arith.cmpf oge, %60, %61 : vector<8x8xf32>
    %cst_39 = arith.constant 2.000000e-01 : f32
    %63 = vector.broadcast %cst_39 : f32 to vector<8x8xf32>
    %64 = arith.mulf %63, %60 : vector<8x8xf32>
    %65 = arith.select %62, %60, %64 : vector<8x8xi1>, vector<8x8xf32>
    %66 = arith.truncf %65 : vector<8x8xf32> to vector<8x8xbf16>
    %c0_40 = arith.constant 0 : index
    %c0_41 = arith.constant 0 : index
    %c0_42 = arith.constant 0 : index
    %c0_43 = arith.constant 0 : index
    %67 = vector.load %arg5[%c0_40, %c0_41, %c0_42, %c0_43] : memref<1x1x8x8xbf16, #tpu.memory_space<vmem>>, vector<1x1x8x8xbf16>
    %68 = vector.shape_cast %67 : vector<1x1x8x8xbf16> to vector<8x8xbf16>
    %69 = vector.shape_cast %66 : vector<8x8xbf16> to vector<1x1x8x8xbf16>
    tpu.vector_store %arg5[%c0_40, %c0_41, %c0_42, %c0_43], %69 {strides = array<i32>} : memref<1x1x8x8xbf16, #tpu.memory_space<vmem>>, vector<1x1x8x8xbf16>,
    return
  }
  func.func @transform_0(%arg0: i32, %arg1: i32) -> (i32, i32, i32, i32) {
    %c0_i32 = arith.constant 0 : i32
    %c0_i32_0 = arith.constant 0 : i32
    %c0_i32_1 = arith.constant 0 : i32
    %c0_i32_2 = arith.constant 0 : i32
    return %arg0, %c0_i32, %c0_i32_0, %c0_i32_1 : i32, i32, i32, i32
  }
  func.func @transform_1(%arg0: i32, %arg1: i32) -> (i32, i32, i32) {
    %c0_i32 = arith.constant 0 : i32
    %c0_i32_0 = arith.constant 0 : i32
    %c0_i32_1 = arith.constant 0 : i32
    %c0_i32_2 = arith.constant 0 : i32
    return %c0_i32, %c0_i32_0, %c0_i32_1 : i32, i32, i32
  }
  func.func @transform_2(%arg0: i32, %arg1: i32) -> (i32, i32) {
    %c0_i32 = arith.constant 0 : i32
    %c0_i32_0 = arith.constant 0 : i32
    %c0_i32_1 = arith.constant 0 : i32
    return %c0_i32, %c0_i32_0 : i32, i32
  }
  func.func @transform_3(%arg0: i32, %arg1: i32) -> (i32, i32, i32, i32) {
    %c0_i32 = arith.constant 0 : i32
    %c0_i32_0 = arith.constant 0 : i32
    %c0_i32_1 = arith.constant 0 : i32
    return %arg0, %arg1, %c0_i32, %c0_i32_0 : i32, i32, i32, i32
  }
}

</mosaic_0001>

<bundles_post_ra>
// kernel: tpu_custom_call.1
= control target key start
LH: loop header
LB: loop body
LE: loop exit
PB: predicated region body
PF: predicated region fallthrough
CT: control target
= control target key end

     0   :  { %8 = vsyncpa [#allocation3], 0  ;;  %s1348_s0 = inlined_call_operand.vmem [shape: bf16[2,10,10,16], index: 0, kind: input, shape index: {}]   ;;  %s1349_s1 = inlined_call_operand.vmem [shape: bf16[9,16,8], index: 1, kind: input, shape index: {}]   ;;  %s1350_s2 = inlined_call_operand.vmem [shape: f32[1,8], index: 2, kind: input, shape index: {}]   ;;  %s1351_s3 = inlined_call_operand.hbm [shape: bf16[2,8,8,8], index: 3, kind: output, shape index: {}]  }
   0x1   :  { %10 = vsyncpa [#allocation3 + $0x1], 0  ;;  %s1159_s12 = smov 0   ;;  %s1161_s13 = smov 0  }
   0x2   :  { %s1163_s14 = smov 0   ;;  %s1165_s15 = smov 0  }
   0x3   :  { %s1167_s16 = smov 0   ;;  %s1169_s17 = smov 0  }
   0x4   :  { %s1171_s18 = smov 0   ;;  %s1173_s19 = smov 0  }
   0x5 LB: > { %s825_s20 = sadd.s32 4294967295, %s1134_s19   ;;  %s826_s21 = sadd.s32 4294967294, %s1134_s19   ;;  %s1134_s19 = sphi %s1173_s19, %s16_s19   ;;  %s1130_s18 = sphi %s1171_s18, %s1360_s18   ;;  %s1126_s17 = sphi %s1169_s17, %s1359_s17   ;;  %s1122_s16 = sphi %s1167_s16, %s1358_s16   ;;  %s1118_s15 = sphi %s1165_s15, %s1357_s15   ;;  %s1114_s14 = sphi %s1163_s14, %s1356_s14   ;;  %s1110_s13 = sphi %s1161_s13, %s1355_s13   ;;  %s1106_s12 = sphi %s1159_s12, %s1354_s12  }
   0x6   : > { %s25_s22 = sadd.s32 1, %s1126_s17  ;;  %s28_s23 = sadd.s32 1, %s1130_s18 }
   0x7   : > { %p26_p0 = scmp.ge.s32.totalorder %s25_s22, 8  ;;  %p115_p1 = scmp.ne.s32.totalorder %s1114_s14, %s1110_s13 }
   0x8   : > { %p116_p2 = scmp.eq.s32.totalorder %s825_s20, 15  ;;  %p121_p5 = scmp.ne.s32.totalorder %s1110_s13, %s1106_s12 }
   0x9   : > { %s1362_s22 = smov (%p26_p0, %s25_s22), 0  ;;  %s1364_s23 = smov (!%p26_p0, %s28_s23), %s1130_s18 }
   0xa   : > { %s101_s24 = ssub.s32 %s1126_s17, %s1362_s22  ;;  %p1210_p3 = por %p116_p2, %p115_p1 }
   0xb   : > { %p30_p4 = scmp.ge.s32.totalorder %s1364_s23, 2  ;;  %p122_p6 = scmp.eq.s32.totalorder %s826_s21, 15 }
   0xc   : > { %p829_p7 = scmp.ge.s32.totalorder %s1134_s19, 1  ;;  %p154_p9 = scmp.lt.s32.totalorder %s1134_s19, 17 }
   0xd   : > { %s1366_s23 = smov (%p30_p4, %s1364_s23), 0  ;;  %p1219_p8 = por %p122_p6, %p121_p5 }
   0xe   : > { %s100_s27 = ssub.s32 %s1130_s18, %s1366_s23  ;;  %s105_s28 = sadd.s32 1, %s1114_s14 }
   0xf   : > { %s102_s29 = sor.u32 %s101_s24, %s100_s27  ;;  %p155_p10 = pnand %p829_p7, %p154_p9 }
  0x10   : > { %p103_p11 = scmp.eq.s32.totalorder %s102_s29, 0  ;;  %p178_p12 = scmp.lt.s32.totalorder (!%p155_p10), %s1122_s16, 1 }
  0x11   : > { %158 = sbr.rel (%p155_p10) target bundleno = 284 (0x11c), region = 32  ;;  %s883_s10 = sshll.u32 (!%p155_p10), %s1118_s15, 3 }
  0x12   : > { %s1228_s30 = scalar_select %p103_p11, %s1114_s14, %s105_s28  }
  0x13   : > { %s175_s27 = sand.u32 (!%p155_p10), 1, %s1110_s13   ;;  %s879_s29 = sshll.u32 (!%p155_p10), %s1122_s16, 3 }
  0x14   : > { %s741_s6 = sadd.s32 (!%p155_p10), %s1118_s15, %s879_s29  ;;  %s730_s20 = scalar_lea.sflag (!%p155_p10), [#allocation3], %s175_s27 }
  0x15   : > { %s880_s7 = sshll.u32 (!%p155_p10), %s741_s6, 6 }
  0x16   : > { %v1030_v0 = vld [vmem:[%s1349_s1 + $0x8] sm:$0xff]   ;;  %v1136_v1 = vmov 0.0   ;;  %v1031_v2 = vld [vmem:[%s1349_s1] sm:$0xff]   ;;  %vm1137_vm0 = vmmov 0   ;;  %s179_s8 = scalar_select %p178_p12, %s1122_s16, 1  ;;  %vm212_vm1 = vcmask 130048  }
  0x17   : > { %902 = vmatprep.subr.bf16.mxu0 %v1136_v1  ;;  %908 = vmatprep.subr.bf16.mxu1 %v1136_v1  ;;  %v1034_v3 = vld [vmem:[%s1349_s1 + $0x18] sm:$0xff]   ;;  %v1033_v10 = vld [vmem:[%s1349_s1 + $0x10] sm:$0xff]   ;;  %v1037_v16 = vld [vmem:[%s1349_s1 + $0x28] sm:$0xff]   ;;  %vm727_vm3 = vcmask 60416   ;;  %s743_s11 = scalar_lea.hbm %s1351_s3, %s880_s7 }
  0x18   : > { %903 = vmatpush3.bf16.msra.mxu0 %v1030_v0  ;;  %904 = vmatprep.mubr.msk.bf16.mxu0 %vm1137_vm0, %v1136_v1  ;;  %s956_s9 = smul.u32 80, %s179_s8  ;;  %v1036_v23 = vld [vmem:[%s1349_s1 + $0x20] sm:$0xff]   ;;  %v1039_v24 = vld [vmem:[%s1349_s1 + $0x38] sm:$0xff]   ;;  %v1038_v31 = vld [vmem:[%s1349_s1 + $0x30] sm:$0xff]  }
  0x19   : > { %909 = vmatpush3.bf16.msra.mxu1 %v1031_v2  ;;  %910 = vmatprep.mubr.msk.bf16.mxu1 %vm1137_vm0, %v1136_v1  ;;  %v1041_v32 = vld [vmem:[%s1349_s1 + $0x40] sm:$0xff]  }
  0x1a   : > { %914 = vmatprep.subr.bf16.mxu0 %v1136_v1  ;;  %920 = vmatprep.subr.bf16.mxu1 %v1136_v1  ;;  %s182_s21 = scalar_lea.vmem %s1348_s0, %s956_s9 }
  0x1b   : > { %s186_s28 = scalar_lea.vmem %s182_s21, %s883_s10  ;;  %s1138_s21 = smov [#allocation2]  }
  0x1c   : > { %v187_v4 = vld [vmem:[%s186_s28] sm:$0xf]  ;;  %v188_v5 = vld [vmem:[%s186_s28 + $0x4] sm:$0x1]  ;;  %v846_v11 = vld [vmem:[%s186_s28 + $0x8] sm:$0xf] }
  0x1d   : > { %v836_v6 = vcombine.low %v187_v4, %v188_v5  ;;  %911 = vmatmul.mubr.msk.bf16.vlgmr.msra.gmra.mxu1 %vm212_vm1, %v187_v4  ;;  %v847_v12 = vld [vmem:[%s186_s28 + $0xc] sm:$0x1]  ;;  %v862_v13 = vld [vmem:[%s186_s28 + $0x10] sm:$0xf]  ;;  %v863_v14 = vld [vmem:[%s186_s28 + $0x14] sm:$0x1] }
  0x1e   : > { %921 = vmatpush3.bf16.msra.mxu1 %v1034_v3  ;;  %922 = vmatprep.mubr.msk.bf16.mxu1 %vm1137_vm0, %v1136_v1  ;;  %v854_v17 = vcombine.low %v846_v11, %v847_v12  ;;  %v870_v18 = vcombine.low %v862_v13, %v863_v14  ;;  %s830_s28 = sshll.u32 %s175_s27, 2  ;;  %s1046_s24 = sshll.u32 %s1138_s21, 4  ;;  %s1047_s24 = int_to_ptr.vmem [resolvable:$false] %s1046_s24 }
  0x1f   : > { %v200_v7 = vshrl.u32 %v836_v6, 16  ;;  %v202_v8 = vshll.u32 %v836_v6, 16  ;;  %932 = vmatprep.subr.bf16.mxu1 %v1136_v1  ;;  %v308_v19 = vrot.slane %v836_v6, 1  ;;  %s177_s8 = scalar_lea.vmem [#allocation2], %s830_s28  ;;  %s1048_s28 = scalar_lea.vmem %s1047_s24, 128 }
  0x20   : > { %v429_v20 = vshll.u32 %v854_v17, 16  ;;  %v486_v21 = vrot.slane %v854_v17, 1  ;;  %v607_v22 = vshll.u32 %v870_v18, 16  ;;  %v427_v25 = vshrl.u32 %v854_v17, 16  ;;  %s745_s9 = sshll.u32 %s177_s8, 4  ;;  %s746_s9 = int_to_ptr.vmem [resolvable:$true] %s745_s9 }
  0x21   : > { %v204_v9 = vrot.slane %v202_v8, 1  ;;  %v605_v27 = vshrl.u32 %v870_v18, 16  ;;  %v664_v33 = vrot.slane %v870_v18, 1  ;;  %s1042_s15 = scalar_lea.vmem %s746_s9, 64  ;;  %p1049_p2 = scmp.lt.s32.totalorder %s746_s9, %s1047_s24 }
  0x22   : > { %v431_v26 = vrot.slane %v429_v20, 1  ;;  %v609_v28 = vrot.slane %v607_v22, 1  ;;  %p1043_p13 = scmp.ne.s32.totalorder %s746_s9, %s1042_s15  ;;  %p1050_p4 = scmp.lt.s32.totalorder %s1048_s28, %s1042_s15 }
  0x23   : > { %v205_v15 = vor.u32 %v204_v9, %v200_v7 }
  0x24   : > { %v432_v29 = vor.u32 %v431_v26, %v427_v25  ;;  %v610_v30 = vor.u32 %v609_v28, %v605_v27  ;;  %p1044_p0 = pnand %p1043_p13, %p1210_p3  ;;  %p1051_p5 = por %p1050_p4, %p1049_p2 }
  0x25   : > { %905 = vmatmul.mubr.msk.bf16.vlgmr.msra.gmra.mxu0 %vm212_vm1, %v205_v15  ;;  %923 = vmatmul.mubr.msk.bf16.vlgmr.msra.gmra.mxu1 %vm212_vm1, %v846_v11 }
  0x26   : > { %915 = vmatpush3.bf16.msra.mxu0 %v1033_v10  ;;  %916 = vmatprep.mubr.msk.bf16.mxu0 %vm1137_vm0, %v1136_v1  ;;  %v877_v10 = vld [vmem:[%s1350_s2] ss:$0 sm:$0xff]  ;;  %p1045_p1 = pneg %p1044_p0 }
  0x27   : > { %926 = vmatprep.subr.bf16.mxu0 %v1136_v1  ;;  %933 = vmatpush3.bf16.msra.mxu1 %v1037_v16 }
  0x28   : > { %934 = vmatprep.mubr.msk.bf16.mxu1 %vm1137_vm0, %v1136_v1  ;;  %944 = vmatprep.subr.bf16.mxu1 %v1136_v1  ;;  %p1052_p6 = pnand %p1051_p5, %p1045_p1 }
  0x2d   : > { %917 = vmatmul.mubr.msk.bf16.vlgmr.msra.gmra.mxu0 %vm212_vm1, %v308_v19  ;;  %935 = vmatmul.mubr.msk.bf16.vlgmr.msra.gmra.mxu1 %vm212_vm1, %v486_v21 }
  0x2e   : > { %927 = vmatpush3.bf16.msra.mxu0 %v1036_v23  ;;  %928 = vmatprep.mubr.msk.bf16.mxu0 %vm1137_vm0, %v1136_v1 }
  0x2f   : > { %938 = vmatprep.subr.bf16.mxu0 %v1136_v1  ;;  %945 = vmatpush3.bf16.msra.mxu1 %v1039_v24 }
  0x30   : > { %946 = vmatprep.mubr.msk.bf16.mxu1 %vm1137_vm0, %v1136_v1 }
  0x35   : > { %929 = vmatmul.mubr.msk.bf16.vlgmr.msra.gmra.mxu0 %vm212_vm1, %v432_v29  ;;  %947 = vmatmul.mubr.msk.bf16.vlgmr.msra.gmra.mxu1 %vm212_vm1, %v610_v30 }
  0x36   : > { %939 = vmatpush3.bf16.msra.mxu0 %v1038_v31  ;;  %940 = vmatprep.mubr.msk.bf16.mxu0 %vm1137_vm0, %v1136_v1 }
  0x37   : > { %950 = vmatprep.subr.bf16.mxu0 %v1136_v1 }
  0x3d   : > { %941 = vmatmul.mubr.msk.bf16.vlgmr.msra.gmra.mxu0 %vm212_vm1, %v862_v13 }
  0x3e   : > { %951 = vmatpush3.bf16.msra.mxu0 %v1041_v32  ;;  %952 = vmatprep.mubr.msk.bf16.mxu0 %vm1137_vm0, %v1136_v1 }
  0x45   : > { %953 = vmatmul.mubr.msk.bf16.vlgmr.msra.gmra.mxu0 %vm212_vm1, %v664_v33 }
  0xdd   : > { %v299_v34 = vpop.f32.mrf.mxu1 }
  0xdf   : > { %v912_v35 = vpop.f32.mrf.mxu1 }
  0xe1   : > { %v302_v36 = vpop.f32.mrf.mxu1 }
  0xe3   : > { %v913_v37 = vpop.f32.mrf.mxu1 }
  0xe5   : > { %v250_v38 = vpop.f32.mrf.mxu0  ;;  %v411_v39 = vpop.f32.mrf.mxu1 }
  0xe6   : > { %v300_v52 = vadd.f32 %v299_v34, %v250_v38 }
  0xe7   : > { %v906_v40 = vpop.f32.mrf.mxu0  ;;  %v924_v41 = vpop.f32.mrf.mxu1 }
  0xe9   : > { %v253_v42 = vpop.f32.mrf.mxu0  ;;  %v414_v43 = vpop.f32.mrf.mxu1 }
  0xeb   : > { %v907_v44 = vpop.f32.mrf.mxu0  ;;  %v925_v45 = vpop.f32.mrf.mxu1 }
  0xed   : > { %v352_v46 = vpop.f32.mrf.mxu0  ;;  %v530_v47 = vpop.f32.mrf.mxu1 }
  0xee   : > { %v358_v55 = vadd.f32 %v352_v46, %v300_v52 }
  0xef   : > { %v918_v48 = vpop.f32.mrf.mxu0  ;;  %v936_v49 = vpop.f32.mrf.mxu1 }
  0xf0   : > { %v417_v60 = vadd.f32 %v411_v39, %v358_v55 }
  0xf1   : > { %v355_v50 = vpop.f32.mrf.mxu0  ;;  %v533_v51 = vpop.f32.mrf.mxu1 }
  0xf3   : > { %v919_v53 = vpop.f32.mrf.mxu0  ;;  %v937_v54 = vpop.f32.mrf.mxu1 }
  0xf5   : > { %v476_v56 = vpop.f32.mrf.mxu0  ;;  %v654_v57 = vpop.f32.mrf.mxu1 }
  0xf6   : > { %v482_v63 = vadd.f32 %v476_v56, %v417_v60 }
  0xf7   : > { %v930_v58 = vpop.f32.mrf.mxu0  ;;  %v948_v59 = vpop.f32.mrf.mxu1 }
  0xf8   : > { %v536_v3 = vadd.f32 %v530_v47, %v482_v63 }
  0xf9   : > { %v479_v61 = vpop.f32.mrf.mxu0  ;;  %v657_v62 = vpop.f32.mrf.mxu1 }
  0xfb   : > { %v931_v0 = vpop.f32.mrf.mxu0  ;;  %v949_v1 = vpop.f32.mrf.mxu1 }
  0xfd   : > { %v589_v2 = vpop.f32.mrf.mxu0 }
  0xfe   : > { %v595_v5 = vadd.f32 %v589_v2, %v536_v3 }
  0xff   : > { %v942_v4 = vpop.f32.mrf.mxu0 }
 0x100   : > { %v660_v8 = vadd.f32 %v654_v57, %v595_v5 }
 0x101   : > { %v592_v6 = vpop.f32.mrf.mxu0 }
 0x103   : > { %v943_v7 = vpop.f32.mrf.mxu0 }
 0x105   : > { %v708_v9 = vpop.f32.mrf.mxu0 }
 0x106   : > { %v714_v11 = vadd.f32 %v708_v9, %v660_v8 }
 0x107   : > { %v954_v12 = vpop.f32.mrf.mxu0 }
 0x108   : > { %v722_v13 = vadd.f32 %v877_v10, %v714_v11 }
 0x109   : > { %v711_v14 = vpop.f32.mrf.mxu0 }
 0x10a   : > { %vm723_vm2 = vcmp.ge.f32.partialorder %v722_v13, 0.0  ;;  %v724_v15 = vmul.f32 0.2, %v722_v13 }
 0x10b   : > { %v955_v16 = vpop.f32.mrf.mxu0 }
 0x10c   : > { %v725_v17 = vsel %vm723_vm2, %v722_v13, %v724_v15 }
 0x10d   : > { %v726_v18 = vpack.c.bf16 %v725_v17, %v725_v17 }
 0x10f   : > { %728 = vst.msk [vmem:[%s177_s8] sm:$0xf] %vm727_vm3, %v726_v18 }
 0x110   : > { %1055 = shalt.err (!%p1052_p6)
}
 0x111   : > { %s1056_s29 = scalar_lea.hbm %s743_s11, 64  ;;  %s1060_s5 = scalar_lea.hbm %s1351_s3, 1024 }
 0x112   : > { %p1057_p7 = scmp.ne.s32.totalorder %s743_s11, %s1056_s29  ;;  %p1061_p11 = scmp.lt.s32.totalorder %s743_s11, %s1351_s3 }
 0x113   : > { %p1062_p12 = scmp.lt.s32.totalorder %s1060_s5, %s1056_s29 }
 0x114   : > { %p1058_p9 = pnand %p1057_p7, %p1210_p3 }
 0x115   : > { %p1063_p13 = por %p1062_p12, %p1061_p11 }
 0x116   : > { %p1059_p10 = pneg %p1058_p9 }
 0x118   : > { %p1064_p0 = pnand %p1063_p13, %p1059_p10 }
 0x11a   : > { %1067 = shalt.err (!%p1064_p0)
}
 0x11b   : > { %957 = dma.vmem_to_hbm [thread:$0]  (%p1210_p3), %s746_s9, 64, %s743_s11, %s730_s20  }
 0x11c PF: > { %p963_p1 = scmp.ge.s32.totalorder %s1134_s19, 2  ;;  %s757_s8 = sand.u32 1, %s1106_s12  }
 0x11d   : > { %s758_s16 = scalar_lea.sflag [#allocation3], %s757_s8 }
 0x11e   : > { %p960_p2 = pnand %p963_p1, %p1219_p8 }
 0x120   : > { %p961_p4 = pneg %p960_p2 }
 0x122   : > { %1101 = dma.done.wait (%p961_p4), %s758_s16, 64  }
 0x123   : > { %1103 = vsyncadd (%p961_p4), %s758_s16, 4294967232  ;;  %s16_s19 = sadd.s32 1, %s1134_s19   ;;  %s1354_s12 = smov %s1110_s13 }
 0x124   : > { %p13_p5 = scmp.ge.s32.totalorder %s16_s19, 18   ;;  %s1355_s13 = smov %s1114_s14 }
 0x125   : > { %s1356_s14 = smov %s1228_s30  ;;  %s1357_s15 = smov %s1126_s17 }
 0x126   : > { %s1358_s16 = smov %s1130_s18  ;;  %s1359_s17 = smov %s1362_s22 }
 0x127   : > { %s1360_s18 = smov %s1366_s23  ;;  %15 = sbr.rel (!%p13_p5) target bundleno = 5 (0x5), region = 78 }
 0x12c   :  { %763 = vsyncpa [#allocation3], 1 }
 0x12d   :  { %765 = vsyncpa [#allocation3 + $0x1], 1 }

</bundles_post_ra>
